<compile_context>
chip_gen: v5e
topology: v5e:2x2
jax: 0.10.0
libtpu: 0.0.40
codegen_flags: <defaults>
</compile_context>

<pallas_src>
import functools
import math

import numpy as np

import jax
import jax.numpy as jnp
from jax import lax
from jax.experimental import pallas as pl
from jax.experimental.pallas import tpu as pltpu

DT = jnp.float32


# --------------------------------------------------------------------------
# Weight preparation: 3x3 "same" conv as 3 banded matmuls on width-flattened rows
# --------------------------------------------------------------------------

def _banded_conv_weights(w_hwio, w_img, col_perm=None):
    """Return bw of shape (3, W*Cin, W*Cout).

    For a width-flattened, height-zero-padded image P (row r = padded image row,
    lane = x*Cin + ci):
        conv_out[y, x*Cout + co] = sum_dy (P[y+dy, :] @ bw[dy])[x*Cout + co]
    Out-of-range width taps are folded into zero weights (so NO width padding is
    needed in the activation buffer).  `col_perm` optionally permutes the output
    columns (used to emit [even | odd] column order for the fused max-pool).
    """
    kh, kw, cin, cout = w_hwio.shape
    xin = jnp.arange(w_img)[:, None]          # input (image) column
    xout = jnp.arange(w_img)[None, :]         # output column (pre-permutation)
    tap = xin - xout + 1                      # dx tap index in [0, 3)
    valid = (tap >= 0) & (tap < kw)
    tap_c = jnp.clip(tap, 0, kw - 1)
    bws = []
    for dy in range(kh):
        w_dy = w_hwio[dy]                     # (kw, Cin, Cout)
        b4 = w_dy[tap_c]                      # (W, W, Cin, Cout)
        b4 = jnp.where(valid[:, :, None, None], b4, 0.0)
        if col_perm is not None:
            b4 = b4[:, col_perm, :, :]
        bws.append(b4.transpose(0, 2, 1, 3).reshape(w_img * cin, w_img * cout))
    return jnp.stack(bws, axis=0).astype(DT)


# --------------------------------------------------------------------------
# Pallas kernels
# --------------------------------------------------------------------------

def _firstconv_pool_kernel(x_ref, bw_ref, b_ref, o_ref, p_ref, wp_ref, zp_ref,
                           *, H, W, Cin, Cout):
    # x_ref : (1, H, W*Cin)      width-flattened input image (one batch element)
    # bw_ref: (3, W*Cin, W*Cout) banded conv weights, output cols in [even|odd] order
    # b_ref : (1, W*Cout)        per-column-tiled bias
    # o_ref : (1, Ho, Wo*Cout)   pooled, lane-dense output
    Ho, Wo = (H + 1) // 2, (W + 1) // 2
    WoC = Wo * Cout

    # in-kernel zero halo padding along H (width padding is folded into weights)
    p_ref[...] = jnp.zeros_like(p_ref)
    p_ref[1:H + 1, :] = x_ref[0].astype(jnp.float32)

    # conv3x3 + bias + ReLU: 3 banded matmuls (K = W*Cin, N = W*Cout)
    acc = jnp.zeros((H, W * Cout), jnp.float32)
    for dy in range(3):
        acc += jnp.dot(p_ref[dy:dy + H, :], bw_ref[dy],
                       preferred_element_type=jnp.float32)
    y = jnp.maximum(acc + b_ref[...], 0.0)        # (H, W*Cout) = [even | odd]

    # width max-pool (kernel 3, stride 2, pad 1).  y >= 0, so zero padding is
    # equivalent to -inf padding.
    even = y[:, :WoC]                             # conv col 2q
    odd = y[:, WoC:]                              # conv col 2q+1
    wp_ref[...] = jnp.zeros_like(wp_ref)
    wp_ref[:, Cout:] = odd
    odd_prev = wp_ref[:, :WoC]                    # conv col 2q-1 (zero at q=0)
    z = jnp.maximum(jnp.maximum(even, odd), odd_prev)   # (H, Wo*Cout)

    # height max-pool (stride 2) via strided row reads of a zero-topped scratch
    zp_ref[...] = jnp.zeros_like(zp_ref)
    zp_ref[1:H + 1, :] = z
    pooled = jnp.maximum(
        jnp.maximum(zp_ref[pl.ds(0, Ho, stride=2), :],
                    zp_ref[pl.ds(1, Ho, stride=2), :]),
        zp_ref[pl.ds(2, Ho, stride=2), :])        # (Ho, Wo*Cout)

    o_ref[...] = pooled[None].astype(o_ref.dtype)


def _basic_block_kernel(x_ref, bw0_ref, b0_ref, bw1_ref, b1_ref, g_ref, o_ref,
                        p0_ref, p1_ref, *, H, W, C):
    # Fused CnnBasicBlock: out = x + relu(conv1(relu(conv0(x)))) * sigmoid(gate)
    # x_ref : (1, H, W*C) lane-dense activation; g_ref: (1, 1, W*C) sigmoid(gate) tiled.
    WC = W * C

    p0_ref[...] = jnp.zeros_like(p0_ref)
    x = x_ref[0].astype(jnp.float32)              # (H, W*C)
    p0_ref[1:H + 1, :] = x

    acc = jnp.zeros((H, WC), jnp.float32)
    for dy in range(3):
        acc += jnp.dot(p0_ref[dy:dy + H, :], bw0_ref[dy],
                       preferred_element_type=jnp.float32)
    h = jnp.maximum(acc + b0_ref[...], 0.0)       # conv0 + ReLU, stays in VMEM

    p1_ref[...] = jnp.zeros_like(p1_ref)
    p1_ref[1:H + 1, :] = h

    acc = jnp.zeros((H, WC), jnp.float32)
    for dy in range(3):
        acc += jnp.dot(p1_ref[dy:dy + H, :], bw1_ref[dy],
                       preferred_element_type=jnp.float32)
    px = jnp.maximum(acc + b1_ref[...], 0.0)      # conv1 + ReLU

    o_ref[...] = (x + px * g_ref[0])[None].astype(o_ref.dtype)


# --------------------------------------------------------------------------
# pallas_call wrappers
# --------------------------------------------------------------------------

def firstconv_pool(x_flat, bw, b_flat, *, H, W, Cin, Cout):
    N = x_flat.shape[0]
    Ho, Wo = (H + 1) // 2, (W + 1) // 2
    kernel = functools.partial(_firstconv_pool_kernel, H=H, W=W, Cin=Cin, Cout=Cout)
    return pl.pallas_call(
        kernel,
        out_shape=jax.ShapeDtypeStruct((N, Ho, Wo * Cout), x_flat.dtype),
        grid=(N,),
        in_specs=[
            pl.BlockSpec((1, H, W * Cin), lambda n: (n, 0, 0)),
            pl.BlockSpec((3, W * Cin, W * Cout), lambda n: (0, 0, 0)),
            pl.BlockSpec((1, W * Cout), lambda n: (0, 0)),
        ],
        out_specs=pl.BlockSpec((1, Ho, Wo * Cout), lambda n: (n, 0, 0)),
        scratch_shapes=[
            pltpu.VMEM((H + 2, W * Cin), jnp.float32),        # H-padded image
            pltpu.VMEM((H, (Wo + 1) * Cout), jnp.float32),    # width-pool shift buf
            pltpu.VMEM((H + 1, Wo * Cout), jnp.float32),      # height-pool buf
        ],
        compiler_params=pltpu.CompilerParams(dimension_semantics=("parallel",)),
    )(x_flat, bw, b_flat)


def basic_block(x_flat, bw0, b0, bw1, b1, g_flat, *, H, W, C):
    N = x_flat.shape[0]
    kernel = functools.partial(_basic_block_kernel, H=H, W=W, C=C)
    return pl.pallas_call(
        kernel,
        out_shape=jax.ShapeDtypeStruct((N, H, W * C), x_flat.dtype),
        grid=(N,),
        in_specs=[
            pl.BlockSpec((1, H, W * C), lambda n: (n, 0, 0)),
            pl.BlockSpec((3, W * C, W * C), lambda n: (0, 0, 0)),
            pl.BlockSpec((1, W * C), lambda n: (0, 0)),
            pl.BlockSpec((3, W * C, W * C), lambda n: (0, 0, 0)),
            pl.BlockSpec((1, W * C), lambda n: (0, 0)),
            pl.BlockSpec((1, 1, W * C), lambda n: (n, 0, 0)),
        ],
        out_specs=pl.BlockSpec((1, H, W * C), lambda n: (n, 0, 0)),
        scratch_shapes=[
            pltpu.VMEM((H + 2, W * C), jnp.float32),          # padded x
            pltpu.VMEM((H + 2, W * C), jnp.float32),          # padded conv0 output
        ],
        compiler_params=pltpu.CompilerParams(dimension_semantics=("parallel",)),
    )(x_flat, bw0, b0, bw1, b1, g_flat)


# --------------------------------------------------------------------------
# parameters (synthetic init mirroring FanInInitReLULayer: normalized conv
# weights, zeroed conv biases)
# --------------------------------------------------------------------------

def init_params(key, inchan, outchan, nblock, goal_dim, init_scale=1.0):
    keys = jax.random.split(key, 1 + nblock)

    def fanin_conv(k, cin, cout, scale):
        w = jax.random.normal(k, (3, 3, cin, cout), DT)            # HWIO
        norm = jnp.sqrt(jnp.sum(w * w, axis=(0, 1, 2), keepdims=True))
        return w * (scale / norm)

    params = {
        "firstconv_w": fanin_conv(keys[0], inchan, outchan, 1.0),
        "firstconv_b": jnp.zeros((outchan,), DT),
        "blocks": [],
    }
    s = math.sqrt(init_scale / math.sqrt(nblock))
    for i in range(nblock):
        k = jax.random.split(keys[1 + i], 6)
        params["blocks"].append({
            "conv0_w": fanin_conv(k[0], outchan, outchan, s),
            "conv0_b": jnp.zeros((outchan,), DT),
            "conv1_w": fanin_conv(k[1], outchan, outchan, s),
            "conv1_b": jnp.zeros((outchan,), DT),
            "g_w1": jax.random.normal(k[2], (goal_dim, 2 * outchan), DT) / math.sqrt(goal_dim),
            "g_b1": jax.random.normal(k[3], (2 * outchan,), DT) * 0.1,
            "g_w2": jax.random.normal(k[4], (2 * outchan, outchan), DT) / math.sqrt(2 * outchan),
            "g_b2": jax.random.normal(k[5], (outchan,), DT) * 0.1,
        })
    return params


# --------------------------------------------------------------------------
# forward pass (pool=True, post_pool_groups=None, no norms)
# --------------------------------------------------------------------------

def cnn_down_stack_forward(params, x_nchw, goal_embeddings):
    N, Cin, H, W = x_nchw.shape
    Cout = params["firstconv_w"].shape[-1]
    assert H % 2 == 0 and W % 2 == 0, "demo assumes even spatial dims"
    Ho, Wo = (H + 1) // 2, (W + 1) // 2

    # NCHW -> NHWC -> width-flattened lane-dense layout (N, H, W*C)
    x = jnp.transpose(x_nchw, (0, 2, 3, 1)).reshape(N, H, W * Cin)

    # fused firstconv + ReLU + max_pool2d(3, 2, 1); conv output columns are
    # emitted in [even | odd] order so the width pool needs no gathers.
    col_perm = np.concatenate([np.arange(0, W, 2), np.arange(1, W, 2)])
    bwf = _banded_conv_weights(params["firstconv_w"], W, col_perm=col_perm)
    bf = jnp.tile(params["firstconv_b"], W)[None, :]
    x = firstconv_pool(x, bwf, bf, H=H, W=W, Cin=Cin, Cout=Cout)    # (N, Ho, Wo*Cout)

    for blk in params["blocks"]:
        # tiny goal-gate MLP: left to XLA (per perf review), sigmoid folded in
        g = jax.nn.sigmoid(
            jnp.maximum(goal_embeddings @ blk["g_w1"] + blk["g_b1"], 0.0)
            @ blk["g_w2"] + blk["g_b2"])                            # (N, Cout)
        g_flat = jnp.tile(g, (1, Wo))[:, None, :]                   # (N, 1, Wo*Cout)

        bw0 = _banded_conv_weights(blk["conv0_w"], Wo)
        b0 = jnp.tile(blk["conv0_b"], Wo)[None, :]
        bw1 = _banded_conv_weights(blk["conv1_w"], Wo)
        b1 = jnp.tile(blk["conv1_b"], Wo)[None, :]
        x = basic_block(x, bw0, b0, bw1, b1, g_flat, H=Ho, W=Wo, C=Cout)

    # back to PyTorch-style NCHW
    return jnp.transpose(x.reshape(N, Ho, Wo, Cout), (0, 3, 1, 2))

# TODO(synk): post_pool_groups / batch-norm / group-norm branches of the module
# are disabled under the default config and are not implemented here.


# --------------------------------------------------------------------------
# pure-JAX (XLA) reference
# --------------------------------------------------------------------------

def reference_forward(params, x_nchw, goal):
    def conv_relu(x, w, b):
        y = lax.conv_general_dilated(x, w, (1, 1), ((1, 1), (1, 1)),
                                     dimension_numbers=("NHWC", "HWIO", "NHWC"))
        return jnp.maximum(y + b.reshape(1, 1, 1, -1), 0.0)

    x = jnp.transpose(x_nchw, (0, 2, 3, 1))
    x = conv_relu(x, params["firstconv_w"], params["firstconv_b"])
    x = lax.reduce_window(x, -jnp.inf, lax.max, (1, 3, 3, 1), (1, 2, 2, 1),
                          ((0, 0), (1, 1), (1, 1), (0, 0)))
    for blk in params["blocks"]:
        g = jnp.maximum(goal @ blk["g_w1"] + blk["g_b1"], 0.0) @ blk["g_w2"] + blk["g_b2"]
        px = conv_relu(conv_relu(x, blk["conv0_w"], blk["conv0_b"]),
                       blk["conv1_w"], blk["conv1_b"])
        x = x + px * jax.nn.sigmoid(g)[:, None, None, :]
    return jnp.transpose(x, (0, 3, 1, 2))


# --------------------------------------------------------------------------
# main
# --------------------------------------------------------------------------

if __name__ == "__main__":
    key = jax.random.PRNGKey(0)
    k_p, k_x, k_g = jax.random.split(key, 3)

    B, inchan, H, W = 2, 4, 16, 16
    outchan, nblock, goal_dim = 16, 2, 8

    params = init_params(k_p, inchan, outchan, nblock, goal_dim, init_scale=1.0)
    x = jax.random.normal(k_x, (B, inchan, H, W), DT)          # PyTorch-style NCHW
    goal = jax.random.normal(k_g, (B, goal_dim), DT)

    out = jax.jit(cnn_down_stack_forward)(params, x, goal)
    out = jax.block_until_ready(out)

    assert out.shape == (B, outchan, (H + 1) // 2, (W + 1) // 2), out.shape
    ref = reference_forward(params, x, goal)
    np.testing.assert_allclose(np.asarray(out), np.asarray(ref), rtol=2e-3, atol=2e-3)
    print("KERNEL_OK")
</pallas_src>

<mosaic_0001>
module attributes {stable_mosaic.version = 11 : i64} {
  func.func @_firstconv_pool_kernel(%arg0: i32, %arg1: memref<1x16x64xf32, #tpu.memory_space<vmem>>, %arg2: memref<3x64x256xf32, #tpu.memory_space<vmem>>, %arg3: memref<1x256xf32, #tpu.memory_space<vmem>>, %arg4: memref<1x8x128xf32, #tpu.memory_space<vmem>>, %arg5: memref<18x64xf32, #tpu.memory_space<vmem>>, %arg6: memref<16x144xf32, #tpu.memory_space<vmem>>, %arg7: memref<17x128xf32, #tpu.memory_space<vmem>>) attributes {dimension_semantics = [#tpu.dimension_semantics<parallel>], iteration_bounds = array<i64: 2>, scalar_prefetch = 0 : i64, scratch_operands = 3 : i64, tpu.core_type = #tpu.core_type<tc>, window_params = [{transform_indices = @transform_0, window_bounds = array<i64: 1, 16, 64>}, {pipeline_mode = #tpu.pipeline_mode<synchronous>, transform_indices = @transform_1, window_bounds = array<i64: 3, 64, 256>}, {pipeline_mode = #tpu.pipeline_mode<synchronous>, transform_indices = @transform_2, window_bounds = array<i64: 1, 256>}, {transform_indices = @transform_3, window_bounds = array<i64: 1, 8, 128>}]} {
    %cst = arith.constant 0.000000e+00 : f32
    %0 = vector.broadcast %cst : f32 to vector<18x64xf32>
    %c0 = arith.constant 0 : index
    %c0_0 = arith.constant 0 : index
    %1 = vector.load %arg5[%c0, %c0_0] : memref<18x64xf32, #tpu.memory_space<vmem>>, vector<18x64xf32>
    tpu.vector_store %arg5[%c0, %c0_0], %0 {strides = array<i32>} : memref<18x64xf32, #tpu.memory_space<vmem>>, vector<18x64xf32>,
    %c0_1 = arith.constant 0 : index
    %c0_2 = arith.constant 0 : index
    %c0_3 = arith.constant 0 : index
    %2 = vector.load %arg1[%c0_1, %c0_2, %c0_3] : memref<1x16x64xf32, #tpu.memory_space<vmem>>, vector<1x16x64xf32>
    %3 = vector.shape_cast %2 : vector<1x16x64xf32> to vector<16x64xf32>
    %c1 = arith.constant 1 : index
    %c0_4 = arith.constant 0 : index
    %4 = vector.load %arg5[%c1, %c0_4] : memref<18x64xf32, #tpu.memory_space<vmem>>, vector<16x64xf32>
    tpu.vector_store %arg5[%c1, %c0_4], %3 {strides = array<i32>} : memref<18x64xf32, #tpu.memory_space<vmem>>, vector<16x64xf32>,
    %cst_5 = arith.constant 0.000000e+00 : f32
    %5 = vector.broadcast %cst_5 : f32 to vector<16x256xf32>
    %c0_6 = arith.constant 0 : index
    %c0_7 = arith.constant 0 : index
    %6 = vector.load %arg5[%c0_6, %c0_7] : memref<18x64xf32, #tpu.memory_space<vmem>>, vector<16x64xf32>
    %c0_8 = arith.constant 0 : index
    %c0_9 = arith.constant 0 : index
    %c0_10 = arith.constant 0 : index
    %7 = vector.load %arg2[%c0_8, %c0_9, %c0_10] : memref<3x64x256xf32, #tpu.memory_space<vmem>>, vector<1x64x256xf32>
    %8 = vector.shape_cast %7 : vector<1x64x256xf32> to vector<64x256xf32>
    %cst_11 = arith.constant dense<0.000000e+00> : vector<16x256xf32>
    %9 = tpu.matmul %6, %8, %cst_11 {dimension_numbers = #tpu.dot_dimension_numbers<[1], [0], [0], [1], [0, 0, 1, 1], [], []>} : vector<16x64xf32>, vector<64x256xf32>, vector<16x256xf32> -> vector<16x256xf32>
    %10 = arith.addf %5, %9 : vector<16x256xf32>
    %c1_12 = arith.constant 1 : index
    %c0_13 = arith.constant 0 : index
    %11 = vector.load %arg5[%c1_12, %c0_13] : memref<18x64xf32, #tpu.memory_space<vmem>>, vector<16x64xf32>
    %c1_14 = arith.constant 1 : index
    %c0_15 = arith.constant 0 : index
    %c0_16 = arith.constant 0 : index
    %12 = vector.load %arg2[%c1_14, %c0_15, %c0_16] : memref<3x64x256xf32, #tpu.memory_space<vmem>>, vector<1x64x256xf32>
    %13 = vector.shape_cast %12 : vector<1x64x256xf32> to vector<64x256xf32>
    %cst_17 = arith.constant dense<0.000000e+00> : vector<16x256xf32>
    %14 = tpu.matmul %11, %13, %cst_17 {dimension_numbers = #tpu.dot_dimension_numbers<[1], [0], [0], [1], [0, 0, 1, 1], [], []>} : vector<16x64xf32>, vector<64x256xf32>, vector<16x256xf32> -> vector<16x256xf32>
    %15 = arith.addf %10, %14 : vector<16x256xf32>
    %c2 = arith.constant 2 : index
    %c0_18 = arith.constant 0 : index
    %16 = vector.load %arg5[%c2, %c0_18] : memref<18x64xf32, #tpu.memory_space<vmem>>, vector<16x64xf32>
    %c2_19 = arith.constant 2 : index
    %c0_20 = arith.constant 0 : index
    %c0_21 = arith.constant 0 : index
    %17 = vector.load %arg2[%c2_19, %c0_20, %c0_21] : memref<3x64x256xf32, #tpu.memory_space<vmem>>, vector<1x64x256xf32>
    %18 = vector.shape_cast %17 : vector<1x64x256xf32> to vector<64x256xf32>
    %cst_22 = arith.constant dense<0.000000e+00> : vector<16x256xf32>
    %19 = tpu.matmul %16, %18, %cst_22 {dimension_numbers = #tpu.dot_dimension_numbers<[1], [0], [0], [1], [0, 0, 1, 1], [], []>} : vector<16x64xf32>, vector<64x256xf32>, vector<16x256xf32> -> vector<16x256xf32>
    %20 = arith.addf %15, %19 : vector<16x256xf32>
    %c0_23 = arith.constant 0 : index
    %c0_24 = arith.constant 0 : index
    %21 = vector.load %arg3[%c0_23, %c0_24] : memref<1x256xf32, #tpu.memory_space<vmem>>, vector<1x256xf32>
    %22 = vector.broadcast %21 : vector<1x256xf32> to vector<16x256xf32>
    %23 = arith.addf %20, %22 : vector<16x256xf32>
    %cst_25 = arith.constant 0.000000e+00 : f32
    %24 = vector.broadcast %cst_25 : f32 to vector<16x256xf32>
    %25 = arith.maximumf %23, %24 : vector<16x256xf32>
    %26 = vector.extract_strided_slice %25 {offsets = [0, 0], sizes = [16, 128], strides = [1, 1]} : vector<16x256xf32> to vector<16x128xf32>
    %27 = vector.extract_strided_slice %25 {offsets = [0, 128], sizes = [16, 128], strides = [1, 1]} : vector<16x256xf32> to vector<16x128xf32>
    %cst_26 = arith.constant 0.000000e+00 : f32
    %28 = vector.broadcast %cst_26 : f32 to vector<16x144xf32>
    %c0_27 = arith.constant 0 : index
    %c0_28 = arith.constant 0 : index
    %29 = vector.load %arg6[%c0_27, %c0_28] : memref<16x144xf32, #tpu.memory_space<vmem>>, vector<16x144xf32>
    tpu.vector_store %arg6[%c0_27, %c0_28], %28 {strides = array<i32>} : memref<16x144xf32, #tpu.memory_space<vmem>>, vector<16x144xf32>,
    %c0_29 = arith.constant 0 : index
    %c16 = arith.constant 16 : index
    %30 = vector.load %arg6[%c0_29, %c16] : memref<16x144xf32, #tpu.memory_space<vmem>>, vector<16x128xf32>
    tpu.vector_store %arg6[%c0_29, %c16], %27 {strides = array<i32>} : memref<16x144xf32, #tpu.memory_space<vmem>>, vector<16x128xf32>,
    %c0_30 = arith.constant 0 : index
    %c0_31 = arith.constant 0 : index
    %31 = vector.load %arg6[%c0_30, %c0_31] : memref<16x144xf32, #tpu.memory_space<vmem>>, vector<16x128xf32>
    %32 = arith.maximumf %26, %27 : vector<16x128xf32>
    %33 = arith.maximumf %32, %31 : vector<16x128xf32>
    %cst_32 = arith.constant 0.000000e+00 : f32
    %34 = vector.broadcast %cst_32 : f32 to vector<17x128xf32>
    %c0_33 = arith.constant 0 : index
    %c0_34 = arith.constant 0 : index
    %35 = vector.load %arg7[%c0_33, %c0_34] : memref<17x128xf32, #tpu.memory_space<vmem>>, vector<17x128xf32>
    tpu.vector_store %arg7[%c0_33, %c0_34], %34 {strides = array<i32>} : memref<17x128xf32, #tpu.memory_space<vmem>>, vector<17x128xf32>,
    %c1_35 = arith.constant 1 : index
    %c0_36 = arith.constant 0 : index
    %36 = vector.load %arg7[%c1_35, %c0_36] : memref<17x128xf32, #tpu.memory_space<vmem>>, vector<16x128xf32>
    tpu.vector_store %arg7[%c1_35, %c0_36], %33 {strides = array<i32>} : memref<17x128xf32, #tpu.memory_space<vmem>>, vector<16x128xf32>,
    %c0_37 = arith.constant 0 : index
    %c0_38 = arith.constant 0 : index
    %37 = tpu.strided_load %arg7[%c0_37, %c0_38] {strides = array<i32: 2, 1>} : memref<17x128xf32, #tpu.memory_space<vmem>>, vector<8x128xf32>
    %c1_39 = arith.constant 1 : index
    %c0_40 = arith.constant 0 : index
    %38 = tpu.strided_load %arg7[%c1_39, %c0_40] {strides = array<i32: 2, 1>} : memref<17x128xf32, #tpu.memory_space<vmem>>, vector<8x128xf32>
    %39 = arith.maximumf %37, %38 : vector<8x128xf32>
    %c2_41 = arith.constant 2 : index
    %c0_42 = arith.constant 0 : index
    %40 = tpu.strided_load %arg7[%c2_41, %c0_42] {strides = array<i32: 2, 1>} : memref<17x128xf32, #tpu.memory_space<vmem>>, vector<8x128xf32>
    %41 = arith.maximumf %39, %40 : vector<8x128xf32>
    %42 = vector.shape_cast %41 : vector<8x128xf32> to vector<1x8x128xf32>
    %c0_43 = arith.constant 0 : index
    %c0_44 = arith.constant 0 : index
    %c0_45 = arith.constant 0 : index
    %43 = vector.load %arg4[%c0_43, %c0_44, %c0_45] : memref<1x8x128xf32, #tpu.memory_space<vmem>>, vector<1x8x128xf32>
    tpu.vector_store %arg4[%c0_43, %c0_44, %c0_45], %42 {strides = array<i32>} : memref<1x8x128xf32, #tpu.memory_space<vmem>>, vector<1x8x128xf32>,
    return
  }
  func.func @transform_0(%arg0: i32) -> (i32, i32, i32) {
    %c0_i32 = arith.constant 0 : i32
    %c0_i32_0 = arith.constant 0 : i32
    %c0_i32_1 = arith.constant 0 : i32
    return %arg0, %c0_i32, %c0_i32_0 : i32, i32, i32
  }
  func.func @transform_1(%arg0: i32) -> (i32, i32, i32) {
    %c0_i32 = arith.constant 0 : i32
    %c0_i32_0 = arith.constant 0 : i32
    %c0_i32_1 = arith.constant 0 : i32
    %c0_i32_2 = arith.constant 0 : i32
    return %c0_i32, %c0_i32_0, %c0_i32_1 : i32, i32, i32
  }
  func.func @transform_2(%arg0: i32) -> (i32, i32) {
    %c0_i32 = arith.constant 0 : i32
    %c0_i32_0 = arith.constant 0 : i32
    %c0_i32_1 = arith.constant 0 : i32
    return %c0_i32, %c0_i32_0 : i32, i32
  }
  func.func @transform_3(%arg0: i32) -> (i32, i32, i32) {
    %c0_i32 = arith.constant 0 : i32
    %c0_i32_0 = arith.constant 0 : i32
    %c0_i32_1 = arith.constant 0 : i32
    return %arg0, %c0_i32, %c0_i32_0 : i32, i32, i32
  }
}

module attributes {stable_mosaic.version = 11 : i64} {
  func.func @_basic_block_kernel(%arg0: i32, %arg1: memref<1x8x128xf32, #tpu.memory_space<vmem>>, %arg2: memref<3x128x128xf32, #tpu.memory_space<vmem>>, %arg3: memref<1x128xf32, #tpu.memory_space<vmem>>, %arg4: memref<3x128x128xf32, #tpu.memory_space<vmem>>, %arg5: memref<1x128xf32, #tpu.memory_space<vmem>>, %arg6: memref<1x1x128xf32, #tpu.memory_space<vmem>>, %arg7: memref<1x8x128xf32, #tpu.memory_space<vmem>>, %arg8: memref<10x128xf32, #tpu.memory_space<vmem>>, %arg9: memref<10x128xf32, #tpu.memory_space<vmem>>) attributes {dimension_semantics = [#tpu.dimension_semantics<parallel>], iteration_bounds = array<i64: 2>, scalar_prefetch = 0 : i64, scratch_operands = 2 : i64, tpu.core_type = #tpu.core_type<tc>, window_params = [{transform_indices = @transform_0, window_bounds = array<i64: 1, 8, 128>}, {pipeline_mode = #tpu.pipeline_mode<synchronous>, transform_indices = @transform_1, window_bounds = array<i64: 3, 128, 128>}, {pipeline_mode = #tpu.pipeline_mode<synchronous>, transform_indices = @transform_2, window_bounds = array<i64: 1, 128>}, {pipeline_mode = #tpu.pipeline_mode<synchronous>, transform_indices = @transform_3, window_bounds = array<i64: 3, 128, 128>}, {pipeline_mode = #tpu.pipeline_mode<synchronous>, transform_indices = @transform_4, window_bounds = array<i64: 1, 128>}, {transform_indices = @transform_5, window_bounds = array<i64: 1, 1, 128>}, {transform_indices = @transform_6, window_bounds = array<i64: 1, 8, 128>}]} {
    %cst = arith.constant 0.000000e+00 : f32
    %0 = vector.broadcast %cst : f32 to vector<10x128xf32>
    %c0 = arith.constant 0 : index
    %c0_0 = arith.constant 0 : index
    %1 = vector.load %arg8[%c0, %c0_0] : memref<10x128xf32, #tpu.memory_space<vmem>>, vector<10x128xf32>
    tpu.vector_store %arg8[%c0, %c0_0], %0 {strides = array<i32>} : memref<10x128xf32, #tpu.memory_space<vmem>>, vector<10x128xf32>,
    %c0_1 = arith.constant 0 : index
    %c0_2 = arith.constant 0 : index
    %c0_3 = arith.constant 0 : index
    %2 = vector.load %arg1[%c0_1, %c0_2, %c0_3] : memref<1x8x128xf32, #tpu.memory_space<vmem>>, vector<1x8x128xf32>
    %3 = vector.shape_cast %2 : vector<1x8x128xf32> to vector<8x128xf32>
    %c1 = arith.constant 1 : index
    %c0_4 = arith.constant 0 : index
    %4 = vector.load %arg8[%c1, %c0_4] : memref<10x128xf32, #tpu.memory_space<vmem>>, vector<8x128xf32>
    tpu.vector_store %arg8[%c1, %c0_4], %3 {strides = array<i32>} : memref<10x128xf32, #tpu.memory_space<vmem>>, vector<8x128xf32>,
    %cst_5 = arith.constant 0.000000e+00 : f32
    %5 = vector.broadcast %cst_5 : f32 to vector<8x128xf32>
    %c0_6 = arith.constant 0 : index
    %c0_7 = arith.constant 0 : index
    %6 = vector.load %arg8[%c0_6, %c0_7] : memref<10x128xf32, #tpu.memory_space<vmem>>, vector<8x128xf32>
    %c0_8 = arith.constant 0 : index
    %c0_9 = arith.constant 0 : index
    %c0_10 = arith.constant 0 : index
    %7 = vector.load %arg2[%c0_8, %c0_9, %c0_10] : memref<3x128x128xf32, #tpu.memory_space<vmem>>, vector<1x128x128xf32>
    %8 = vector.shape_cast %7 : vector<1x128x128xf32> to vector<128x128xf32>
    %cst_11 = arith.constant dense<0.000000e+00> : vector<8x128xf32>
    %9 = tpu.matmul %6, %8, %cst_11 {dimension_numbers = #tpu.dot_dimension_numbers<[1], [0], [0], [1], [0, 0, 1, 1], [], []>} : vector<8x128xf32>, vector<128x128xf32>, vector<8x128xf32> -> vector<8x128xf32>
    %10 = arith.addf %5, %9 : vector<8x128xf32>
    %c1_12 = arith.constant 1 : index
    %c0_13 = arith.constant 0 : index
    %11 = vector.load %arg8[%c1_12, %c0_13] : memref<10x128xf32, #tpu.memory_space<vmem>>, vector<8x128xf32>
    %c1_14 = arith.constant 1 : index
    %c0_15 = arith.constant 0 : index
    %c0_16 = arith.constant 0 : index
    %12 = vector.load %arg2[%c1_14, %c0_15, %c0_16] : memref<3x128x128xf32, #tpu.memory_space<vmem>>, vector<1x128x128xf32>
    %13 = vector.shape_cast %12 : vector<1x128x128xf32> to vector<128x128xf32>
    %cst_17 = arith.constant dense<0.000000e+00> : vector<8x128xf32>
    %14 = tpu.matmul %11, %13, %cst_17 {dimension_numbers = #tpu.dot_dimension_numbers<[1], [0], [0], [1], [0, 0, 1, 1], [], []>} : vector<8x128xf32>, vector<128x128xf32>, vector<8x128xf32> -> vector<8x128xf32>
    %15 = arith.addf %10, %14 : vector<8x128xf32>
    %c2 = arith.constant 2 : index
    %c0_18 = arith.constant 0 : index
    %16 = vector.load %arg8[%c2, %c0_18] : memref<10x128xf32, #tpu.memory_space<vmem>>, vector<8x128xf32>
    %c2_19 = arith.constant 2 : index
    %c0_20 = arith.constant 0 : index
    %c0_21 = arith.constant 0 : index
    %17 = vector.load %arg2[%c2_19, %c0_20, %c0_21] : memref<3x128x128xf32, #tpu.memory_space<vmem>>, vector<1x128x128xf32>
    %18 = vector.shape_cast %17 : vector<1x128x128xf32> to vector<128x128xf32>
    %cst_22 = arith.constant dense<0.000000e+00> : vector<8x128xf32>
    %19 = tpu.matmul %16, %18, %cst_22 {dimension_numbers = #tpu.dot_dimension_numbers<[1], [0], [0], [1], [0, 0, 1, 1], [], []>} : vector<8x128xf32>, vector<128x128xf32>, vector<8x128xf32> -> vector<8x128xf32>
    %20 = arith.addf %15, %19 : vector<8x128xf32>
    %c0_23 = arith.constant 0 : index
    %c0_24 = arith.constant 0 : index
    %21 = vector.load %arg3[%c0_23, %c0_24] : memref<1x128xf32, #tpu.memory_space<vmem>>, vector<1x128xf32>
    %22 = vector.broadcast %21 : vector<1x128xf32> to vector<8x128xf32>
    %23 = arith.addf %20, %22 : vector<8x128xf32>
    %cst_25 = arith.constant 0.000000e+00 : f32
    %24 = vector.broadcast %cst_25 : f32 to vector<8x128xf32>
    %25 = arith.maximumf %23, %24 : vector<8x128xf32>
    %cst_26 = arith.constant 0.000000e+00 : f32
    %26 = vector.broadcast %cst_26 : f32 to vector<10x128xf32>
    %c0_27 = arith.constant 0 : index
    %c0_28 = arith.constant 0 : index
    %27 = vector.load %arg9[%c0_27, %c0_28] : memref<10x128xf32, #tpu.memory_space<vmem>>, vector<10x128xf32>
    tpu.vector_store %arg9[%c0_27, %c0_28], %26 {strides = array<i32>} : memref<10x128xf32, #tpu.memory_space<vmem>>, vector<10x128xf32>,
    %c1_29 = arith.constant 1 : index
    %c0_30 = arith.constant 0 : index
    %28 = vector.load %arg9[%c1_29, %c0_30] : memref<10x128xf32, #tpu.memory_space<vmem>>, vector<8x128xf32>
    tpu.vector_store %arg9[%c1_29, %c0_30], %25 {strides = array<i32>} : memref<10x128xf32, #tpu.memory_space<vmem>>, vector<8x128xf32>,
    %cst_31 = arith.constant 0.000000e+00 : f32
    %29 = vector.broadcast %cst_31 : f32 to vector<8x128xf32>
    %c0_32 = arith.constant 0 : index
    %c0_33 = arith.constant 0 : index
    %30 = vector.load %arg9[%c0_32, %c0_33] : memref<10x128xf32, #tpu.memory_space<vmem>>, vector<8x128xf32>
    %c0_34 = arith.constant 0 : index
    %c0_35 = arith.constant 0 : index
    %c0_36 = arith.constant 0 : index
    %31 = vector.load %arg4[%c0_34, %c0_35, %c0_36] : memref<3x128x128xf32, #tpu.memory_space<vmem>>, vector<1x128x128xf32>
    %32 = vector.shape_cast %31 : vector<1x128x128xf32> to vector<128x128xf32>
    %cst_37 = arith.constant dense<0.000000e+00> : vector<8x128xf32>
    %33 = tpu.matmul %30, %32, %cst_37 {dimension_numbers = #tpu.dot_dimension_numbers<[1], [0], [0], [1], [0, 0, 1, 1], [], []>} : vector<8x128xf32>, vector<128x128xf32>, vector<8x128xf32> -> vector<8x128xf32>
    %34 = arith.addf %29, %33 : vector<8x128xf32>
    %c1_38 = arith.constant 1 : index
    %c0_39 = arith.constant 0 : index
    %35 = vector.load %arg9[%c1_38, %c0_39] : memref<10x128xf32, #tpu.memory_space<vmem>>, vector<8x128xf32>
    %c1_40 = arith.constant 1 : index
    %c0_41 = arith.constant 0 : index
    %c0_42 = arith.constant 0 : index
    %36 = vector.load %arg4[%c1_40, %c0_41, %c0_42] : memref<3x128x128xf32, #tpu.memory_space<vmem>>, vector<1x128x128xf32>
    %37 = vector.shape_cast %36 : vector<1x128x128xf32> to vector<128x128xf32>
    %cst_43 = arith.constant dense<0.000000e+00> : vector<8x128xf32>
    %38 = tpu.matmul %35, %37, %cst_43 {dimension_numbers = #tpu.dot_dimension_numbers<[1], [0], [0], [1], [0, 0, 1, 1], [], []>} : vector<8x128xf32>, vector<128x128xf32>, vector<8x128xf32> -> vector<8x128xf32>
    %39 = arith.addf %34, %38 : vector<8x128xf32>
    %c2_44 = arith.constant 2 : index
    %c0_45 = arith.constant 0 : index
    %40 = vector.load %arg9[%c2_44, %c0_45] : memref<10x128xf32, #tpu.memory_space<vmem>>, vector<8x128xf32>
    %c2_46 = arith.constant 2 : index
    %c0_47 = arith.constant 0 : index
    %c0_48 = arith.constant 0 : index
    %41 = vector.load %arg4[%c2_46, %c0_47, %c0_48] : memref<3x128x128xf32, #tpu.memory_space<vmem>>, vector<1x128x128xf32>
    %42 = vector.shape_cast %41 : vector<1x128x128xf32> to vector<128x128xf32>
    %cst_49 = arith.constant dense<0.000000e+00> : vector<8x128xf32>
    %43 = tpu.matmul %40, %42, %cst_49 {dimension_numbers = #tpu.dot_dimension_numbers<[1], [0], [0], [1], [0, 0, 1, 1], [], []>} : vector<8x128xf32>, vector<128x128xf32>, vector<8x128xf32> -> vector<8x128xf32>
    %44 = arith.addf %39, %43 : vector<8x128xf32>
    %c0_50 = arith.constant 0 : index
    %c0_51 = arith.constant 0 : index
    %45 = vector.load %arg5[%c0_50, %c0_51] : memref<1x128xf32, #tpu.memory_space<vmem>>, vector<1x128xf32>
    %46 = vector.broadcast %45 : vector<1x128xf32> to vector<8x128xf32>
    %47 = arith.addf %44, %46 : vector<8x128xf32>
    %cst_52 = arith.constant 0.000000e+00 : f32
    %48 = vector.broadcast %cst_52 : f32 to vector<8x128xf32>
    %49 = arith.maximumf %47, %48 : vector<8x128xf32>
    %c0_53 = arith.constant 0 : index
    %c0_54 = arith.constant 0 : index
    %c0_55 = arith.constant 0 : index
    %50 = vector.load %arg6[%c0_53, %c0_54, %c0_55] : memref<1x1x128xf32, #tpu.memory_space<vmem>>, vector<1x1x128xf32>
    %51 = vector.shape_cast %50 : vector<1x1x128xf32> to vector<1x128xf32>
    %52 = vector.broadcast %51 : vector<1x128xf32> to vector<8x128xf32>
    %53 = arith.mulf %49, %52 : vector<8x128xf32>
    %54 = arith.addf %3, %53 : vector<8x128xf32>
    %55 = vector.shape_cast %54 : vector<8x128xf32> to vector<1x8x128xf32>
    %c0_56 = arith.constant 0 : index
    %c0_57 = arith.constant 0 : index
    %c0_58 = arith.constant 0 : index
    %56 = vector.load %arg7[%c0_56, %c0_57, %c0_58] : memref<1x8x128xf32, #tpu.memory_space<vmem>>, vector<1x8x128xf32>
    tpu.vector_store %arg7[%c0_56, %c0_57, %c0_58], %55 {strides = array<i32>} : memref<1x8x128xf32, #tpu.memory_space<vmem>>, vector<1x8x128xf32>,
    return
  }
  func.func @transform_0(%arg0: i32) -> (i32, i32, i32) {
    %c0_i32 = arith.constant 0 : i32
    %c0_i32_0 = arith.constant 0 : i32
    %c0_i32_1 = arith.constant 0 : i32
    return %arg0, %c0_i32, %c0_i32_0 : i32, i32, i32
  }
  func.func @transform_1(%arg0: i32) -> (i32, i32, i32) {
    %c0_i32 = arith.constant 0 : i32
    %c0_i32_0 = arith.constant 0 : i32
    %c0_i32_1 = arith.constant 0 : i32
    %c0_i32_2 = arith.constant 0 : i32
    return %c0_i32, %c0_i32_0, %c0_i32_1 : i32, i32, i32
  }
  func.func @transform_2(%arg0: i32) -> (i32, i32) {
    %c0_i32 = arith.constant 0 : i32
    %c0_i32_0 = arith.constant 0 : i32
    %c0_i32_1 = arith.constant 0 : i32
    return %c0_i32, %c0_i32_0 : i32, i32
  }
  func.func @transform_3(%arg0: i32) -> (i32, i32, i32) {
    %c0_i32 = arith.constant 0 : i32
    %c0_i32_0 = arith.constant 0 : i32
    %c0_i32_1 = arith.constant 0 : i32
    %c0_i32_2 = arith.constant 0 : i32
    return %c0_i32, %c0_i32_0, %c0_i32_1 : i32, i32, i32
  }
  func.func @transform_4(%arg0: i32) -> (i32, i32) {
    %c0_i32 = arith.constant 0 : i32
    %c0_i32_0 = arith.constant 0 : i32
    %c0_i32_1 = arith.constant 0 : i32
    return %c0_i32, %c0_i32_0 : i32, i32
  }
  func.func @transform_5(%arg0: i32) -> (i32, i32, i32) {
    %c0_i32 = arith.constant 0 : i32
    %c0_i32_0 = arith.constant 0 : i32
    %c0_i32_1 = arith.constant 0 : i32
    return %arg0, %c0_i32, %c0_i32_0 : i32, i32, i32
  }
  func.func @transform_6(%arg0: i32) -> (i32, i32, i32) {
    %c0_i32 = arith.constant 0 : i32
    %c0_i32_0 = arith.constant 0 : i32
    %c0_i32_1 = arith.constant 0 : i32
    return %arg0, %c0_i32, %c0_i32_0 : i32, i32, i32
  }
}

</mosaic_0001>

<bundles_post_ra>
// kernel: tile.38
= control target key start
LH: loop header
LB: loop body
LE: loop exit
PB: predicated region body
PF: predicated region fallthrough
CT: control target
= control target key end

     0   :  { %s28_s0 = inlined_call_operand.vmem [shape: f32[16], index: 0, kind: input, shape index: {}]   ;;  %s29_s1 = inlined_call_operand.vmem [shape: f32[16,16], index: 1, kind: output, shape index: {}]  }
   0x1   :  { %v4_v0 = vld [vmem:[%s28_s0] ss:$0 sm:$0xff] }
   0x2   :  { %5 = vst [vmem:[%s29_s1] sm:$0xff] %v4_v0 }
   0x3   :  { %8 = vst [vmem:[%s29_s1 + $0x8] sm:$0xff] %v4_v0 }

// kernel: tile.39
= control target key start
LH: loop header
LB: loop body
LE: loop exit
PB: predicated region body
PF: predicated region fallthrough
CT: control target
= control target key end

     0   :  { %s7_s6 = smov 3  ;;  %s21_s9 = smov 3  ;;  %vm4_vm0 = vcmask 130048   ;;  %vm11_vm1 = vcmask 1048448   ;;  %vm18_vm2 = vcmask 917248   ;;  %vm25_vm3 = vcmask 786048   ;;  %s129_s0 = inlined_call_operand.vmem [shape: f32[16,16], index: 0, kind: input, shape index: {}]   ;;  %s130_s1 = inlined_call_operand.vmem [shape: f32[1,256], index: 1, kind: output, shape index: {}]  }
   0x1   :  { %v67_v0 = vld [vmem:[%s129_s0 + $0x7] ss:$8 sm:%s7_s6]   ;;  %s82_s10 = smov 112   ;;  %v69_v1 = vld [vmem:[%s129_s0 + $0x5] ss:$8 sm:%s21_s9]   ;;  %s83_s13 = smov 80  }
   0x2   :  { %9 = vrot.lane.b32.xlu0 %v67_v0, %s82_s10  ;;  %23 = vrot.lane.b32.xlu1 %v69_v1, %s83_s13  ;;  %s14_s14 = smov 3  ;;  %s28_s15 = smov 3  ;;  %vm32_vm4 = vcmask 654848   ;;  %vm39_vm5 = vcmask 523648   ;;  %vm46_vm6 = vcmask 392448   ;;  %vm53_vm7 = vcmask 261248  }
   0x3   :  { %s35_s16 = smov 3  ;;  %v68_v3 = vld [vmem:[%s129_s0 + $0x6] ss:$8 sm:%s14_s14]   ;;  %s84_s21 = smov 48   ;;  %v70_v4 = vld [vmem:[%s129_s0 + $0x4] ss:$8 sm:%s28_s15]  }
   0x4   :  { %v71_v2 = vld [vmem:[%s129_s0 + $0x3] ss:$8 sm:%s35_s16]   ;;  %s42_s24 = smov 3  ;;  %s85_s25 = smov 96  }
   0x5   :  { %37 = vrot.lane.b32.xlu2 %v71_v2, %s84_s21  ;;  %s86_s26 = smov 64   ;;  %s49_s27 = smov 3  ;;  %v72_v5 = vld [vmem:[%s129_s0 + $0x2] ss:$8 sm:%s42_s24]  }
   0x6   :  { %v73_v6 = vld [vmem:[%s129_s0 + $0x1] ss:$8 sm:%s49_s27]   ;;  %s87_s3 = smov 32   ;;  %s88_s4 = smov 16  }
   0x7   :  { %s2_s5 = smov 3 }
   0x8   :  { %v3_v7 = vld [vmem:[%s129_s0] ss:$8 sm:%s2_s5]  }
   0x9   :  { %5 = vst.msk [vmem:[#allocation0] ss:$8 sm:$0x3] %vm4_vm0, %v3_v7  }
   0xa   :  { %16 = vrot.lane.b32.xlu0 %v68_v3, %s85_s25  ;;  %30 = vrot.lane.b32.xlu1 %v70_v4, %s86_s26 }
   0xd   :  { %44 = vrot.lane.b32.xlu2 %v72_v5, %s87_s3 }
  0x12   :  { %51 = vrot.lane.b32.xlu0 %v73_v6, %s88_s4 }
  0x5f   :  { %v38_v8 = vpop.permute.xlu2 %37  }
  0x67   :  { %v45_v9 = vpop.permute.xlu2 %44  }
  0x74   :  { %v10_v10 = vpop.permute.xlu0 %9   ;;  %v24_v11 = vpop.permute.xlu1 %23  }
  0x75   :  { %12 = vst.msk [vmem:[#allocation0] ss:$8 sm:$0x3] %vm11_vm1, %v10_v10  }
  0x7c   :  { %v17_v12 = vpop.permute.xlu0 %16   ;;  %v31_v13 = vpop.permute.xlu1 %30  }
  0x7d   :  { %19 = vst.msk [vmem:[#allocation0] ss:$8 sm:$0x3] %vm18_vm2, %v17_v12  }
  0x7e   :  { %26 = vst.msk [vmem:[#allocation0] ss:$8 sm:$0x3] %vm25_vm3, %v24_v11  }
  0x7f   :  { %33 = vst.msk [vmem:[#allocation0] ss:$8 sm:$0x3] %vm32_vm4, %v31_v13  }
  0x80   :  { %40 = vst.msk [vmem:[#allocation0] ss:$8 sm:$0x3] %vm39_vm5, %v38_v8  }
  0x81   :  { %47 = vst.msk [vmem:[#allocation0] ss:$8 sm:$0x3] %vm46_vm6, %v45_v9  }
  0x84   :  { %v52_v14 = vpop.permute.xlu0 %51  }
  0x85   :  { %54 = vst.msk [vmem:[#allocation0] ss:$8 sm:$0x3] %vm53_vm7, %v52_v14  }
  0x8c   :  { %v57_v15 = vld [vmem:[#allocation0] sm:$0x1]  ;;  %v62_v16 = vld [vmem:[#allocation0 + $0x8] sm:$0x1] }
  0x8d   :  { %60 = vst [vmem:[%s130_s1] sm:$0x1] %v57_v15 }
  0x8e   :  { %74 = vst [vmem:[%s130_s1 + $0x1] sm:$0x1] %v62_v16 }

// kernel: tile.48
= control target key start
LH: loop header
LB: loop body
LE: loop exit
PB: predicated region body
PF: predicated region fallthrough
CT: control target
= control target key end

     0   :  { %s22_s0 = inlined_call_operand.vmem [shape: f32[16], index: 0, kind: input, shape index: {}]   ;;  %s23_s1 = inlined_call_operand.vmem [shape: f32[8,16], index: 1, kind: output, shape index: {}]  }
   0x1   :  { %v4_v0 = vld [vmem:[%s22_s0] ss:$0 sm:$0xff] }
   0x2   :  { %5 = vst [vmem:[%s23_s1] sm:$0xff] %v4_v0 }

// kernel: tile.49
= control target key start
LH: loop header
LB: loop body
LE: loop exit
PB: predicated region body
PF: predicated region fallthrough
CT: control target
= control target key end

     0   :  { %s67_s10 = smov 112   ;;  %s68_s11 = smov 80   ;;  %vm3_vm0 = vcmask 130048   ;;  %vm9_vm1 = vcmask 1048448   ;;  %vm15_vm2 = vcmask 917248   ;;  %vm21_vm3 = vcmask 786048   ;;  %s111_s0 = inlined_call_operand.vmem [shape: f32[8,16], index: 0, kind: input, shape index: {}]   ;;  %s112_s1 = inlined_call_operand.vmem [shape: f32[1,128], index: 1, kind: output, shape index: {}]  }
   0x1   :  { %v53_v0 = vld [vmem:[%s111_s0 + $0x7] sm:$0x1]   ;;  %v55_v1 = vld [vmem:[%s111_s0 + $0x5] sm:$0x1]   ;;  %v57_v2 = vld [vmem:[%s111_s0 + $0x3] sm:$0x1]  }
   0x2   :  { %7 = vrot.lane.b32.xlu0 %v53_v0, %s67_s10  ;;  %19 = vrot.lane.b32.xlu1 %v55_v1, %s68_s11  ;;  %s69_s14 = smov 48   ;;  %v54_v3 = vld [vmem:[%s111_s0 + $0x6] sm:$0x1]   ;;  %v56_v4 = vld [vmem:[%s111_s0 + $0x4] sm:$0x1]   ;;  %s70_s21 = smov 96  }
   0x3   :  { %31 = vrot.lane.b32.xlu2 %v57_v2, %s69_s14  ;;  %v58_v5 = vld [vmem:[%s111_s0 + $0x2] sm:$0x1]   ;;  %s71_s22 = smov 64   ;;  %s72_s23 = smov 32   ;;  %v59_v6 = vld [vmem:[%s111_s0 + $0x1] sm:$0x1]  }
   0x4   :  { %s73_s26 = smov 16   ;;  %v2_v7 = vld [vmem:[%s111_s0] sm:$0x1]   ;;  %vm27_vm4 = vcmask 654848   ;;  %vm33_vm5 = vcmask 523648   ;;  %vm39_vm6 = vcmask 392448  }
   0x5   :  { %4 = vst.msk [vmem:[#allocation0] sm:$0x1] %vm3_vm0, %v2_v7   ;;  %vm45_vm7 = vcmask 261248  }
   0xa   :  { %13 = vrot.lane.b32.xlu0 %v54_v3, %s70_s21  ;;  %25 = vrot.lane.b32.xlu1 %v56_v4, %s71_s22 }
   0xb   :  { %37 = vrot.lane.b32.xlu2 %v58_v5, %s72_s23 }
  0x12   :  { %43 = vrot.lane.b32.xlu0 %v59_v6, %s73_s26 }
  0x5d   :  { %v32_v8 = vpop.permute.xlu2 %31  }
  0x65   :  { %v38_v9 = vpop.permute.xlu2 %37  }
  0x74   :  { %v8_v10 = vpop.permute.xlu0 %7   ;;  %v20_v11 = vpop.permute.xlu1 %19  }
  0x75   :  { %10 = vst.msk [vmem:[#allocation0] sm:$0x1] %vm9_vm1, %v8_v10  }
  0x7c   :  { %v14_v12 = vpop.permute.xlu0 %13   ;;  %v26_v13 = vpop.permute.xlu1 %25  }
  0x7d   :  { %16 = vst.msk [vmem:[#allocation0] sm:$0x1] %vm15_vm2, %v14_v12  }
  0x7e   :  { %22 = vst.msk [vmem:[#allocation0] sm:$0x1] %vm21_vm3, %v20_v11  }
  0x7f   :  { %28 = vst.msk [vmem:[#allocation0] sm:$0x1] %vm27_vm4, %v26_v13  }
  0x80   :  { %34 = vst.msk [vmem:[#allocation0] sm:$0x1] %vm33_vm5, %v32_v8  }
  0x81   :  { %40 = vst.msk [vmem:[#allocation0] sm:$0x1] %vm39_vm6, %v38_v9  }
  0x84   :  { %v44_v14 = vpop.permute.xlu0 %43  }
  0x85   :  { %46 = vst.msk [vmem:[#allocation0] sm:$0x1] %vm45_vm7, %v44_v14  }
  0x8c   :  { %v49_v15 = vld [vmem:[#allocation0] sm:$0x1] }
  0x8d   :  { %52 = vst [vmem:[%s112_s1] sm:$0x1] %v49_v15 }

// kernel: cnn_down_stack_forward.3
= control target key start
LH: loop header
LB: loop body
LE: loop exit
PB: predicated region body
PF: predicated region fallthrough
CT: control target
= control target key end

     0   :  { %s609_s12 = smov 0   ;;  %s800_s0 = inlined_call_operand.vmem [shape: f32[2,16,64], index: 0, kind: input, shape index: {}]   ;;  %s801_s1 = inlined_call_operand.vmem [shape: f32[3,64,256], index: 1, kind: input, shape index: {}]   ;;  %s802_s2 = inlined_call_operand.vmem [shape: f32[1,256], index: 2, kind: input, shape index: {}]   ;;  %s803_s3 = inlined_call_operand.vmem [shape: f32[2,8,128], index: 3, kind: output, shape index: {}]  }
   0x1 LB: > { %s498_s13 = sadd.s32 4294967295, %s585_s12   ;;  %p502_p0 = scmp.ge.s32.totalorder %s585_s12, 1  ;;  %s585_s12 = sphi %s609_s12, %s13_s12  }
   0x2   : > { %p137_p1 = scmp.lt.s32.totalorder %s585_s12, 3 }
   0x4   : > { %p138_p2 = pnand %p502_p0, %p137_p1 }
   0x5   : > { %p626_p3 = scmp.lt.s32.totalorder (!%p138_p2), %s498_s13, 1  ;;  %s588_s17 = smov (!%p138_p2), 16  }
   0x6   : > { %141 = sbr.rel (%p138_p2) target bundleno = 327 (0x147), region = 32 }
   0xb   : > { %v520_v0 = vld [vmem:[%s801_s1 + $0xf0] sm:$0xff]  ;;  %v521_v1 = vld [vmem:[%s801_s1 + $0xf8] sm:$0xff]  ;;  %vm169_vm0 = vcmask 523264   ;;  %v518_v4 = vld [vmem:[%s801_s1 + $0xe0] sm:$0xff]  ;;  %v587_v6 = vmov 0.0   ;;  %s806_s13 = smov (!%p626_p3, %s498_s13), 1 }
   0xc   : > { %v194_v2 = vld [vmem:[%s801_s1 + $0x70] sm:$0xff]  ;;  %229 = vmatpush.msra.mxu0 %v520_v0  ;;  %252 = vmatpush.msra.mxu1 %v521_v1  ;;  %v195_v3 = vld [vmem:[%s801_s1 + $0x78] sm:$0xff]  ;;  %v519_v5 = vld [vmem:[%s801_s1 + $0xe8] sm:$0xff]  ;;  %170 = vst.msk [vmem:[#allocation2] sm:$0xff] %vm169_vm0, %v587_v6  ;;  %s552_s18 = sshll.u32 %s806_s13, 4  ;;  %vm172_vm1 = vcmask 517120  }
   0xd   : > { %281 = vmatpush.msra.mxu2 %v194_v2  ;;  %304 = vmatpush.msra.mxu3 %v195_v3  ;;  %v192_v7 = vld [vmem:[%s801_s1 + $0x60] sm:$0xff]  ;;  %v193_v8 = vld [vmem:[%s801_s1 + $0x68] sm:$0xff]  ;;  %v516_v9 = vld [vmem:[%s801_s1 + $0xd0] sm:$0xff]  ;;  %171 = vst.msk [vmem:[#allocation2 + $0x8] sm:$0xff] %vm169_vm0, %v587_v6  ;;  %s164_s6 = scalar_lea.vmem %s800_s0, %s552_s18  ;;  %vm421_vm2 = vcmask 1047680   ;;  %s505_s18 = sshll.u32 %s806_s13, 3 }
   0xe   : > { %230 = vmatpush.msra.mxu0 %v518_v4  ;;  %253 = vmatpush.msra.mxu1 %v519_v5  ;;  %v517_v10 = vld [vmem:[%s801_s1 + $0xd8] sm:$0xff]  ;;  %v190_v11 = vld [vmem:[%s801_s1 + $0x50] sm:$0xff]  ;;  %408 = vst [vmem:[#allocation3] sm:$0xff] %v587_v6  ;;  %v514_v13 = vld [vmem:[%s801_s1 + $0xc0] sm:$0xff]  ;;  %s168_s21 = scalar_lea.vmem %s803_s3, %s505_s18 }
   0xf   : > { %v191_v12 = vld [vmem:[%s801_s1 + $0x58] sm:$0xff]  ;;  %282 = vmatpush.msra.mxu2 %v192_v7  ;;  %305 = vmatpush.msra.mxu3 %v193_v8  ;;  %v515_v14 = vld [vmem:[%s801_s1 + $0xc8] sm:$0xff]  ;;  %411 = vst [vmem:[#allocation3 + $0x10] sm:$0xff] %v587_v6  ;;  %v188_v15 = vld [vmem:[%s801_s1 + $0x40] sm:$0xff] }
  0x10   : > { %231 = vmatpush.msra.mxu0 %v516_v9  ;;  %254 = vmatpush.msra.mxu1 %v517_v10  ;;  %v189_v16 = vld [vmem:[%s801_s1 + $0x48] sm:$0xff]  ;;  %432 = vst [vmem:[#allocation4] sm:$0xff] %v587_v6  ;;  %v512_v17 = vld [vmem:[%s801_s1 + $0xb0] sm:$0xff]  ;;  %v513_v18 = vld [vmem:[%s801_s1 + $0xb8] sm:$0xff] }
  0x11   : > { %283 = vmatpush.msra.mxu2 %v190_v11  ;;  %306 = vmatpush.msra.mxu3 %v191_v12  ;;  %433 = vst [vmem:[#allocation4 + $0x8] sm:$0xff] %v587_v6  ;;  %v186_v19 = vld [vmem:[%s801_s1 + $0x30] sm:$0xff]  ;;  %v187_v20 = vld [vmem:[%s801_s1 + $0x38] sm:$0xff]  ;;  %v510_v21 = vld [vmem:[%s801_s1 + $0xa0] sm:$0xff] }
  0x12   : > { %232 = vmatpush.msra.mxu0 %v514_v13  ;;  %255 = vmatpush.msra.mxu1 %v515_v14  ;;  %434 = vst [vmem:[#allocation4 + $0x10] sm:$0x1] %v587_v6  ;;  %v511_v22 = vld [vmem:[%s801_s1 + $0xa8] sm:$0xff]  ;;  %v184_v23 = vld [vmem:[%s801_s1 + $0x20] sm:$0xff]  ;;  %v508_v25 = vld [vmem:[%s801_s1 + $0x90] sm:$0xff] }
  0x13   : > { %284 = vmatpush.msra.mxu2 %v188_v15  ;;  %307 = vmatpush.msra.mxu3 %v189_v16  ;;  %173 = vst.msk [vmem:[#allocation2 + $0x10] sm:$0x3] %vm172_vm1, %v587_v6  ;;  %v185_v24 = vld [vmem:[%s801_s1 + $0x28] sm:$0xff]  ;;  %v509_v26 = vld [vmem:[%s801_s1 + $0x98] sm:$0xff]  ;;  %v174_v27 = vld [vmem:[%s164_s6] sm:$0xff] }
  0x14   : > { %233 = vmatpush.msra.mxu0 %v512_v17  ;;  %256 = vmatpush.msra.mxu1 %v513_v18  ;;  %v182_v28 = vld [vmem:[%s801_s1 + $0x10] sm:$0xff]  ;;  %v183_v29 = vld [vmem:[%s801_s1 + $0x18] sm:$0xff]  ;;  %176 = vst.msk [vmem:[#allocation2 + $0x1] sm:$0xff] %vm169_vm0, %v174_v27  ;;  %v506_v30 = vld [vmem:[%s801_s1 + $0x80] sm:$0xff] }
  0x15   : > { %285 = vmatpush.msra.mxu2 %v186_v19  ;;  %308 = vmatpush.msra.mxu3 %v187_v20  ;;  %v507_v31 = vld [vmem:[%s801_s1 + $0x88] sm:$0xff]  ;;  %v180_v32 = vld [vmem:[%s801_s1] sm:$0xff]  ;;  %v545_v35 = vld [vmem:[%s801_s1 + $0x178] sm:$0xff] }
  0x16   : > { %234 = vmatpush.msra.mxu0 %v510_v21  ;;  %257 = vmatpush.msra.mxu1 %v511_v22  ;;  %v181_v33 = vld [vmem:[%s801_s1 + $0x8] sm:$0xff]  ;;  %v544_v36 = vld [vmem:[%s801_s1 + $0x170] sm:$0xff]  ;;  %v542_v40 = vld [vmem:[%s801_s1 + $0x160] sm:$0xff] }
  0x17   : > { %286 = vmatpush.msra.mxu2 %v184_v23  ;;  %309 = vmatpush.msra.mxu3 %v185_v24  ;;  %v175_v34 = vld [vmem:[%s164_s6 + $0x8] sm:$0xff]  ;;  %v541_v41 = vld [vmem:[%s801_s1 + $0x158] sm:$0xff]  ;;  %v540_v42 = vld [vmem:[%s801_s1 + $0x150] sm:$0xff] }
  0x18   : > { %235 = vmatpush.msra.mxu0 %v508_v25  ;;  %258 = vmatpush.msra.mxu1 %v509_v26  ;;  %177 = vst.msk [vmem:[#allocation2 + $0x9] sm:$0xff] %vm169_vm0, %v175_v34  ;;  %v543_v37 = vld [vmem:[%s801_s1 + $0x168] sm:$0xff]  ;;  %v538_v44 = vld [vmem:[%s801_s1 + $0x140] sm:$0xff]  ;;  %v537_v47 = vld [vmem:[%s801_s1 + $0x138] sm:$0xff] }
  0x19   : > { %287 = vmatpush.msra.mxu2 %v182_v28  ;;  %310 = vmatpush.msra.mxu3 %v183_v29  ;;  %v539_v43 = vld [vmem:[%s801_s1 + $0x148] sm:$0xff]  ;;  %v536_v48 = vld [vmem:[%s801_s1 + $0x130] sm:$0xff]  ;;  %v534_v50 = vld [vmem:[%s801_s1 + $0x120] sm:$0xff] }
  0x1a   : > { %236 = vmatpush.msra.mxu0 %v506_v30  ;;  %259 = vmatpush.msra.mxu1 %v507_v31  ;;  %v535_v49 = vld [vmem:[%s801_s1 + $0x128] sm:$0xff]  ;;  %v533_v51 = vld [vmem:[%s801_s1 + $0x118] sm:$0xff]  ;;  %v532_v52 = vld [vmem:[%s801_s1 + $0x110] sm:$0xff] }
  0x1b   : > { %288 = vmatpush.msra.mxu2 %v180_v32  ;;  %311 = vmatpush.msra.mxu3 %v181_v33  ;;  %v196_v38 = vld [vmem:[#allocation2 + $0x1] sm:$0xff] }
  0x1c   : > { %375 = vmatpush.msrb.mxu1 %v545_v35  ;;  %352 = vmatpush.msrb.mxu0 %v544_v36  ;;  %v178_v39 = vld [vmem:[#allocation2] sm:$0xff]  ;;  %v531_v53 = vld [vmem:[%s801_s1 + $0x108] sm:$0xff] }
  0x1d   : > { %553 = vmatpush.msrb.mxu2 %v544_v36  ;;  %561 = vmatpush.msrb.mxu3 %v545_v35  ;;  %v530_v54 = vld [vmem:[%s801_s1 + $0x100] sm:$0xff] }
  0x1e   : > { %522 = vmatmul.msk.f32.vlgmr.msra.gmra.mxu0 %vm169_vm0, %v196_v38  ;;  %524 = vmatmul.msk.f32.vlgmr.msra.gmra.mxu1 %vm169_vm0, %v196_v38  ;;  %v394_v63 = vld [vmem:[%s802_s2] sm:$0x3] }
  0x1f   : > { %526 = vmatmul.msk.f32.vlgmr.msra.gmra.mxu2 %vm169_vm0, %v178_v39  ;;  %528 = vmatmul.msk.f32.vlgmr.msra.gmra.mxu3 %vm169_vm0, %v178_v39  ;;  %v197_v45 = vld [vmem:[#allocation2 + $0x9] sm:$0xff]  ;;  %v396_v3 = vperm.slane %v394_v63, 0  ;;  %v397_v6 = vperm.slane %v394_v63, 1 }
  0x20   : > { %376 = vmatpush.msrb.mxu1 %v543_v37  ;;  %353 = vmatpush.msrb.mxu0 %v542_v40  ;;  %v179_v46 = vld [vmem:[#allocation2 + $0x8] sm:$0xff] }
  0x21   : > { %554 = vmatpush.msrb.mxu2 %v542_v40  ;;  %562 = vmatpush.msrb.mxu3 %v543_v37  ;;  %v319_v55 = vld [vmem:[#allocation2 + $0x2] sm:$0xff]  ;;  %v320_v56 = vld [vmem:[#allocation2 + $0xa] sm:$0xff] }
  0x22   : > { %377 = vmatpush.msrb.mxu1 %v541_v41  ;;  %354 = vmatpush.msrb.mxu0 %v540_v42 }
  0x23   : > { %555 = vmatpush.msrb.mxu2 %v540_v42  ;;  %563 = vmatpush.msrb.mxu3 %v541_v41 }
  0x24   : > { %378 = vmatpush.msrb.mxu1 %v539_v43  ;;  %355 = vmatpush.msrb.mxu0 %v538_v44 }
  0x25   : > { %556 = vmatpush.msrb.mxu2 %v538_v44  ;;  %564 = vmatpush.msrb.mxu3 %v539_v43 }
  0x26   : > { %523 = vmatmul.msk.f32.gmra.mxu0 %vm169_vm0, %v197_v45  ;;  %525 = vmatmul.msk.f32.gmra.mxu1 %vm169_vm0, %v197_v45 }
  0x27   : > { %527 = vmatmul.msk.f32.gmra.mxu2 %vm169_vm0, %v179_v46  ;;  %529 = vmatmul.msk.f32.gmra.mxu3 %vm169_vm0, %v179_v46 }
  0x28   : > { %379 = vmatpush.msrb.mxu1 %v537_v47  ;;  %356 = vmatpush.msrb.mxu0 %v536_v48 }
  0x29   : > { %557 = vmatpush.msrb.mxu2 %v536_v48  ;;  %565 = vmatpush.msrb.mxu3 %v537_v47 }
  0x2a   : > { %380 = vmatpush.msrb.mxu1 %v535_v49  ;;  %357 = vmatpush.msrb.mxu0 %v534_v50 }
  0x2b   : > { %558 = vmatpush.msrb.mxu2 %v534_v50  ;;  %566 = vmatpush.msrb.mxu3 %v535_v49 }
  0x2c   : > { %381 = vmatpush.msrb.mxu1 %v533_v51  ;;  %358 = vmatpush.msrb.mxu0 %v532_v52 }
  0x2d   : > { %559 = vmatpush.msrb.mxu2 %v532_v52  ;;  %567 = vmatpush.msrb.mxu3 %v533_v51 }
  0x2e   : > { %382 = vmatpush.msrb.mxu1 %v531_v53  ;;  %359 = vmatpush.msrb.mxu0 %v530_v54 }
  0x2f   : > { %560 = vmatpush.msrb.mxu2 %v530_v54  ;;  %568 = vmatpush.msrb.mxu3 %v531_v53 }
  0x30   : > { %546 = vmatmul.msk.f32.vlgmr.msrb.gmra.mxu0 %vm169_vm0, %v319_v55  ;;  %547 = vmatmul.msk.f32.vlgmr.msrb.gmra.mxu2 %vm169_vm0, %v320_v56 }
  0x31   : > { %548 = vmatmul.msk.f32.vlgmr.msrb.gmra.mxu1 %vm169_vm0, %v319_v55  ;;  %549 = vmatmul.msk.f32.vlgmr.msrb.gmra.mxu3 %vm169_vm0, %v320_v56 }
  0x9b   : > { %v238_v57 = vpop.f32.mrf.mxu0  ;;  %v261_v58 = vpop.f32.mrf.mxu1 }
  0xa2   : > { %v290_v59 = vpop.f32.mrf.mxu2  ;;  %v313_v60 = vpop.f32.mrf.mxu3 }
  0xa3   : > { %v241_v61 = vpop.f32.mrf.mxu0  ;;  %v264_v62 = vpop.f32.mrf.mxu1  ;;  %v291_v0 = vadd.f32 %v290_v59, %v238_v57  ;;  %v314_v4 = vadd.f32 %v313_v60, %v261_v58 }
  0xaa   : > { %v293_v1 = vpop.f32.mrf.mxu2  ;;  %v316_v2 = vpop.f32.mrf.mxu3 }
  0xab   : > { %v294_v10 = vadd.f32 %v293_v1, %v241_v61  ;;  %v317_v14 = vadd.f32 %v316_v2, %v264_v62 }
  0xad   : > { %v361_v5 = vpop.f32.mrf.mxu0 }
  0xae   : > { %v390_v7 = vadd.f32 %v361_v5, %v291_v0  ;;  %v384_v8 = vpop.f32.mrf.mxu1 }
  0xaf   : > { %v391_v9 = vadd.f32 %v384_v8, %v314_v4 }
  0xb0   : > { %v400_v11 = vadd.f32 %v396_v3, %v390_v7 }
  0xb1   : > { %v401_v12 = vadd.f32 %v397_v6, %v391_v9 }
  0xb2   : > { %v404_v13 = vmax.f32 %v400_v11, 0.0 }
  0xb3   : > { %v364_v15 = vpop.f32.mrf.mxu2  ;;  %v405_v16 = vmax.f32 %v401_v12, 0.0 }
  0xb4   : > { %v392_v17 = vadd.f32 %v364_v15, %v294_v10  ;;  %v387_v18 = vpop.f32.mrf.mxu3 }
  0xb5   : > { %v393_v19 = vadd.f32 %v387_v18, %v317_v14  ;;  %415 = vrot.lane.b32.xlu0 %v405_v16, %s588_s17  ;;  %v428_v20 = vmax.f32 %v404_v13, %v405_v16 }
  0xb6   : > { %v402_v21 = vadd.f32 %v396_v3, %v392_v17 }
  0xb7   : > { %v403_v22 = vadd.f32 %v397_v6, %v393_v19 }
  0xb8   : > { %v406_v23 = vmax.f32 %v402_v21, 0.0 }
  0xb9   : > { %v407_v24 = vmax.f32 %v403_v22, 0.0 }
  0xbb   : > { %v429_v25 = vmax.f32 %v406_v23, %v407_v24 }
  0xbd   : > { %417 = vrot.lane.b32.xlu0 %v407_v24, %s588_s17 }
 0x127   : > { %v416_v26 = vpop.permute.xlu0 %415 }
 0x128   : > { %422 = vst.msk [vmem:[#allocation3] sm:$0xff] %vm421_vm2, %v416_v26 }
 0x12f   : > { %v426_v27 = vld [vmem:[#allocation3] sm:$0xff]  ;;  %v418_v28 = vpop.permute.xlu0 %417 }
 0x130   : > { %v430_v29 = vmax.f32 %v428_v20, %v426_v27  ;;  %424 = vst.msk [vmem:[#allocation3 + $0x10] sm:$0xff] %vm421_vm2, %v418_v28 }
 0x132   : > { %435 = vst [vmem:[#allocation4 + $0x1] sm:$0xff] %v430_v29 }
 0x137   : > { %v427_v30 = vld [vmem:[#allocation3 + $0x10] sm:$0xff] }
 0x138   : > { %v431_v31 = vmax.f32 %v429_v25, %v427_v30 }
 0x13a   : > { %436 = vst [vmem:[#allocation4 + $0x9] sm:$0xff] %v431_v31 }
 0x141   : > { %v437_v32 = vld [vmem:[#allocation4] ss:$2 sm:$0xff]  ;;  %v439_v33 = vld [vmem:[#allocation4 + $0x1] ss:$2 sm:$0xff] }
 0x142   : > { %v440_v34 = vmax.f32 %v437_v32, %v439_v33  ;;  %v442_v35 = vld [vmem:[#allocation4 + $0x2] ss:$2 sm:$0xff] }
 0x144   : > { %v443_v36 = vmax.f32 %v440_v34, %v442_v35 }
 0x146   : > { %444 = vst [vmem:[%s168_s21] sm:$0xff] %v443_v36 }
 0x147 PF: > { %s13_s12 = sadd.s32 1, %s585_s12  }
 0x148   : > { %p10_p4 = scmp.ge.s32.totalorder %s13_s12, 4  }
 0x14a   :  { %12 = sbr.rel (!%p10_p4) target bundleno = 1 (0x1), region = 66 }

// kernel: cnn_down_stack_forward.4
= control target key start
LH: loop header
LB: loop body
LE: loop exit
PB: predicated region body
PF: predicated region fallthrough
CT: control target
= control target key end

     0   :  { %s706_s21 = smov 0   ;;  %s1039_s0 = inlined_call_operand.vmem [shape: f32[2,8,128], index: 0, kind: input, shape index: {}]   ;;  %s1040_s1 = inlined_call_operand.vmem [shape: f32[3,128,128], index: 1, kind: input, shape index: {}]   ;;  %s1041_s2 = inlined_call_operand.vmem [shape: f32[1,128], index: 2, kind: input, shape index: {}]   ;;  %s1042_s3 = inlined_call_operand.vmem [shape: f32[3,128,128], index: 3, kind: input, shape index: {}]   ;;  %s1043_s4 = inlined_call_operand.vmem [shape: f32[1,128], index: 4, kind: input, shape index: {}]   ;;  %s1044_s5 = inlined_call_operand.vmem [shape: f32[2,1,128], index: 5, kind: input, shape index: {}]   ;;  %s1045_s6 = inlined_call_operand.vmem [shape: f32[2,8,128], index: 6, kind: output, shape index: {}]  }
   0x1 LB: > { %s577_s22 = sadd.s32 4294967295, %s668_s21   ;;  %p581_p0 = scmp.ge.s32.totalorder %s668_s21, 1  ;;  %s668_s21 = sphi %s706_s21, %s16_s21  }
   0x2   : > { %p219_p1 = scmp.lt.s32.totalorder %s668_s21, 3 }
   0x4   : > { %p220_p2 = pnand %p581_p0, %p219_p1 }
   0x5   : > { %p723_p3 = scmp.lt.s32.totalorder (!%p220_p2), %s577_s22, 1 }
   0x6   : > { %223 = sbr.rel (%p220_p2) target bundleno = 328 (0x148), region = 44 }
   0xb   : > { %v615_v0 = vld [vmem:[%s1040_s1 + $0x178] sm:$0xff]  ;;  %v614_v1 = vld [vmem:[%s1040_s1 + $0x170] sm:$0xff]  ;;  %v670_v5 = vmov 0.0   ;;  %v613_v6 = vld [vmem:[%s1040_s1 + $0x168] sm:$0xff]  ;;  %s1048_s22 = smov (!%p723_p3, %s577_s22), 1 }
   0xc   : > { %v599_v2 = vld [vmem:[%s1040_s1 + $0xf8] sm:$0xff]  ;;  %358 = vmatpush.msra.mxu2 %v615_v0  ;;  %v598_v4 = vld [vmem:[%s1040_s1 + $0xf0] sm:$0xff]  ;;  %261 = vst [vmem:[#allocation2] sm:$0xff] %v670_v5  ;;  %v597_v8 = vld [vmem:[%s1040_s1 + $0xe8] sm:$0xff]  ;;  %s582_s12 = sshll.u32 %s1048_s22, 3  ;;  %s256_s9 = scalar_lea.vmem %s1044_s5, %s1048_s22 }
   0xd   : > { %300 = vmatpush.msra.mxu0 %v599_v2  ;;  %v281_v3 = vld [vmem:[%s1040_s1 + $0x78] sm:$0xff]  ;;  %v280_v7 = vld [vmem:[%s1040_s1 + $0x70] sm:$0xff]  ;;  %262 = vst [vmem:[#allocation2 + $0x8] sm:$0x3] %v670_v5  ;;  %v279_v9 = vld [vmem:[%s1040_s1 + $0x68] sm:$0xff]  ;;  %s253_s25 = scalar_lea.vmem %s1039_s0, %s582_s12  ;;  %s260_s15 = scalar_lea.vmem %s1045_s6, %s582_s12 }
   0xe   : > { %320 = vmatpush.msra.mxu1 %v281_v3  ;;  %359 = vmatpush.msra.mxu2 %v614_v1  ;;  %385 = vst [vmem:[#allocation3] sm:$0xff] %v670_v5  ;;  %v612_v10 = vld [vmem:[%s1040_s1 + $0x160] sm:$0xff]  ;;  %v611_v13 = vld [vmem:[%s1040_s1 + $0x158] sm:$0xff]  ;;  %v610_v16 = vld [vmem:[%s1040_s1 + $0x150] sm:$0xff] }
   0xf   : > { %301 = vmatpush.msra.mxu0 %v598_v4  ;;  %v596_v11 = vld [vmem:[%s1040_s1 + $0xe0] sm:$0xff]  ;;  %386 = vst [vmem:[#allocation3 + $0x8] sm:$0x3] %v670_v5  ;;  %v595_v14 = vld [vmem:[%s1040_s1 + $0xd8] sm:$0xff]  ;;  %v594_v17 = vld [vmem:[%s1040_s1 + $0xd0] sm:$0xff] }
  0x10   : > { %321 = vmatpush.msra.mxu1 %v280_v7  ;;  %360 = vmatpush.msra.mxu2 %v613_v6  ;;  %v278_v12 = vld [vmem:[%s1040_s1 + $0x60] sm:$0xff]  ;;  %v277_v15 = vld [vmem:[%s1040_s1 + $0x58] sm:$0xff]  ;;  %v276_v18 = vld [vmem:[%s1040_s1 + $0x50] sm:$0xff] }
  0x11   : > { %302 = vmatpush.msra.mxu0 %v597_v8  ;;  %v609_v19 = vld [vmem:[%s1040_s1 + $0x148] sm:$0xff]  ;;  %v608_v22 = vld [vmem:[%s1040_s1 + $0x140] sm:$0xff]  ;;  %v607_v25 = vld [vmem:[%s1040_s1 + $0x138] sm:$0xff] }
  0x12   : > { %322 = vmatpush.msra.mxu1 %v279_v9  ;;  %361 = vmatpush.msra.mxu2 %v612_v10  ;;  %v593_v20 = vld [vmem:[%s1040_s1 + $0xc8] sm:$0xff]  ;;  %v592_v23 = vld [vmem:[%s1040_s1 + $0xc0] sm:$0xff]  ;;  %v591_v26 = vld [vmem:[%s1040_s1 + $0xb8] sm:$0xff] }
  0x13   : > { %303 = vmatpush.msra.mxu0 %v596_v11  ;;  %v275_v21 = vld [vmem:[%s1040_s1 + $0x48] sm:$0xff]  ;;  %v274_v24 = vld [vmem:[%s1040_s1 + $0x40] sm:$0xff]  ;;  %v273_v28 = vld [vmem:[%s1040_s1 + $0x38] sm:$0xff] }
  0x14   : > { %323 = vmatpush.msra.mxu1 %v278_v12  ;;  %362 = vmatpush.msra.mxu2 %v611_v13  ;;  %v806_v27 = vld [vmem:[%s253_s25] sm:$0xff]  ;;  %v606_v29 = vld [vmem:[%s1040_s1 + $0x130] sm:$0xff]  ;;  %v631_v31 = vld [vmem:[%s1042_s3 + $0xf8] sm:$0xff] }
  0x15   : > { %304 = vmatpush.msra.mxu0 %v595_v14  ;;  %264 = vst [vmem:[#allocation2 + $0x1] sm:$0xff] %v806_v27  ;;  %v590_v30 = vld [vmem:[%s1040_s1 + $0xb0] sm:$0xff]  ;;  %v605_v34 = vld [vmem:[%s1040_s1 + $0x128] sm:$0xff]  ;;  %423 = vmatpush.msra.mxu3 %v631_v31  ;;  %v604_v38 = vld [vmem:[%s1040_s1 + $0x120] sm:$0xff] }
  0x16   : > { %324 = vmatpush.msra.mxu1 %v277_v15  ;;  %363 = vmatpush.msra.mxu2 %v610_v16  ;;  %v272_v32 = vld [vmem:[%s1040_s1 + $0x30] sm:$0xff]  ;;  %v589_v35 = vld [vmem:[%s1040_s1 + $0xa8] sm:$0xff]  ;;  %v588_v39 = vld [vmem:[%s1040_s1 + $0xa0] sm:$0xff] }
  0x17   : > { %305 = vmatpush.msra.mxu0 %v594_v17  ;;  %v630_v33 = vld [vmem:[%s1042_s3 + $0xf0] sm:$0xff]  ;;  %v271_v36 = vld [vmem:[%s1040_s1 + $0x28] sm:$0xff]  ;;  %v270_v40 = vld [vmem:[%s1040_s1 + $0x20] sm:$0xff] }
  0x18   : > { %325 = vmatpush.msra.mxu1 %v276_v18  ;;  %364 = vmatpush.msra.mxu2 %v609_v19  ;;  %v629_v37 = vld [vmem:[%s1042_s3 + $0xe8] sm:$0xff]  ;;  %v628_v41 = vld [vmem:[%s1042_s3 + $0xe0] sm:$0xff]  ;;  %v603_v42 = vld [vmem:[%s1040_s1 + $0x118] sm:$0xff] }
  0x19   : > { %306 = vmatpush.msra.mxu0 %v593_v20  ;;  %424 = vmatpush.msra.mxu3 %v630_v33  ;;  %v587_v43 = vld [vmem:[%s1040_s1 + $0x98] sm:$0xff]  ;;  %v602_v44 = vld [vmem:[%s1040_s1 + $0x110] sm:$0xff]  ;;  %v601_v50 = vld [vmem:[%s1040_s1 + $0x108] sm:$0xff] }
  0x1a   : > { %326 = vmatpush.msra.mxu1 %v275_v21  ;;  %365 = vmatpush.msra.mxu2 %v608_v22  ;;  %v269_v45 = vld [vmem:[%s1040_s1 + $0x18] sm:$0xff]  ;;  %v586_v47 = vld [vmem:[%s1040_s1 + $0x90] sm:$0xff]  ;;  %v585_v51 = vld [vmem:[%s1040_s1 + $0x88] sm:$0xff] }
  0x1b   : > { %307 = vmatpush.msra.mxu0 %v592_v23  ;;  %425 = vmatpush.msra.mxu3 %v629_v37  ;;  %v627_v46 = vld [vmem:[%s1042_s3 + $0xd8] sm:$0xff]  ;;  %v268_v48 = vld [vmem:[%s1040_s1 + $0x10] sm:$0xff]  ;;  %v267_v52 = vld [vmem:[%s1040_s1 + $0x8] sm:$0xff] }
  0x1c   : > { %327 = vmatpush.msra.mxu1 %v274_v24  ;;  %366 = vmatpush.msra.mxu2 %v607_v25  ;;  %v626_v49 = vld [vmem:[%s1042_s3 + $0xd0] sm:$0xff]  ;;  %v625_v53 = vld [vmem:[%s1042_s3 + $0xc8] sm:$0xff]  ;;  %v600_v54 = vld [vmem:[%s1040_s1 + $0x100] sm:$0xff] }
  0x1d   : > { %308 = vmatpush.msra.mxu0 %v591_v26  ;;  %426 = vmatpush.msra.mxu3 %v628_v41  ;;  %v584_v55 = vld [vmem:[%s1040_s1 + $0x80] sm:$0xff]  ;;  %v404_v59 = vld [vmem:[%s1042_s3 + $0x78] sm:$0xff]  ;;  %v403_v61 = vld [vmem:[%s1042_s3 + $0x70] sm:$0xff] }
  0x1e   : > { %328 = vmatpush.msra.mxu1 %v273_v28  ;;  %367 = vmatpush.msra.mxu2 %v606_v29  ;;  %v340_v56 = vld [vmem:[#allocation2 + $0x2] sm:$0xff]  ;;  %v647_v60 = vld [vmem:[%s1042_s3 + $0x178] sm:$0xff]  ;;  %v646_v62 = vld [vmem:[%s1042_s3 + $0x170] sm:$0xff] }
  0x1f   : > { %309 = vmatpush.msra.mxu0 %v590_v30  ;;  %427 = vmatpush.msra.mxu3 %v627_v46  ;;  %v266_v57 = vld [vmem:[%s1040_s1] sm:$0xff]  ;;  %v402_v63 = vld [vmem:[%s1042_s3 + $0x68] sm:$0xff]  ;;  %v400_v3 = vld [vmem:[%s1042_s3 + $0x58] sm:$0xff] }
  0x20   : > { %329 = vmatpush.msra.mxu1 %v272_v32  ;;  %368 = vmatpush.msra.mxu2 %v605_v34  ;;  %v265_v58 = vld [vmem:[#allocation2] sm:$0xff]  ;;  %v645_v0 = vld [vmem:[%s1042_s3 + $0x168] sm:$0xff]  ;;  %v643_v4 = vld [vmem:[%s1042_s3 + $0x158] sm:$0xff] }
  0x21   : > { %310 = vmatpush.msra.mxu0 %v589_v35  ;;  %428 = vmatpush.msra.mxu3 %v626_v49  ;;  %v401_v1 = vld [vmem:[%s1042_s3 + $0x60] sm:$0xff]  ;;  %v399_v5 = vld [vmem:[%s1042_s3 + $0x50] sm:$0xff]  ;;  %v398_v7 = vld [vmem:[%s1042_s3 + $0x48] sm:$0xff] }
  0x22   : > { %330 = vmatpush.msra.mxu1 %v271_v36  ;;  %369 = vmatpush.msra.mxu2 %v604_v38  ;;  %v644_v2 = vld [vmem:[%s1042_s3 + $0x160] sm:$0xff]  ;;  %v642_v6 = vld [vmem:[%s1042_s3 + $0x150] sm:$0xff]  ;;  %v641_v8 = vld [vmem:[%s1042_s3 + $0x148] sm:$0xff] }
  0x23   : > { %311 = vmatpush.msra.mxu0 %v588_v39  ;;  %429 = vmatpush.msra.mxu3 %v625_v53  ;;  %v624_v9 = vld [vmem:[%s1042_s3 + $0xc0] sm:$0xff]  ;;  %v623_v10 = vld [vmem:[%s1042_s3 + $0xb8] sm:$0xff]  ;;  %v622_v11 = vld [vmem:[%s1042_s3 + $0xb0] sm:$0xff] }
  0x24   : > { %331 = vmatpush.msra.mxu1 %v270_v40  ;;  %370 = vmatpush.msra.mxu2 %v603_v42  ;;  %v621_v12 = vld [vmem:[%s1042_s3 + $0xa8] sm:$0xff]  ;;  %v397_v13 = vld [vmem:[%s1042_s3 + $0x40] sm:$0xff]  ;;  %v396_v16 = vld [vmem:[%s1042_s3 + $0x38] sm:$0xff] }
  0x25   : > { %312 = vmatpush.msra.mxu0 %v587_v43  ;;  %430 = vmatpush.msra.mxu3 %v624_v9  ;;  %v640_v14 = vld [vmem:[%s1042_s3 + $0x140] sm:$0xff]  ;;  %v639_v17 = vld [vmem:[%s1042_s3 + $0x138] sm:$0xff]  ;;  %v395_v19 = vld [vmem:[%s1042_s3 + $0x30] sm:$0xff] }
  0x26   : > { %332 = vmatpush.msra.mxu1 %v269_v45  ;;  %371 = vmatpush.msra.mxu2 %v602_v44  ;;  %v620_v15 = vld [vmem:[%s1042_s3 + $0xa0] sm:$0xff]  ;;  %v619_v18 = vld [vmem:[%s1042_s3 + $0x98] sm:$0xff]  ;;  %v638_v20 = vld [vmem:[%s1042_s3 + $0x130] sm:$0xff] }
  0x27   : > { %313 = vmatpush.msra.mxu0 %v586_v47  ;;  %431 = vmatpush.msra.mxu3 %v623_v10  ;;  %v618_v21 = vld [vmem:[%s1042_s3 + $0x90] sm:$0xff]  ;;  %v394_v22 = vld [vmem:[%s1042_s3 + $0x28] sm:$0xff]  ;;  %v393_v25 = vld [vmem:[%s1042_s3 + $0x20] sm:$0xff] }
  0x28   : > { %333 = vmatpush.msra.mxu1 %v268_v48  ;;  %372 = vmatpush.msra.mxu2 %v601_v50  ;;  %v637_v23 = vld [vmem:[%s1042_s3 + $0x128] sm:$0xff]  ;;  %v636_v26 = vld [vmem:[%s1042_s3 + $0x120] sm:$0xff]  ;;  %v392_v29 = vld [vmem:[%s1042_s3 + $0x18] sm:$0xff] }
  0x29   : > { %314 = vmatpush.msra.mxu0 %v585_v51  ;;  %432 = vmatpush.msra.mxu3 %v622_v11  ;;  %v617_v24 = vld [vmem:[%s1042_s3 + $0x88] sm:$0xff]  ;;  %v616_v28 = vld [vmem:[%s1042_s3 + $0x80] sm:$0xff]  ;;  %v635_v30 = vld [vmem:[%s1042_s3 + $0x118] sm:$0xff] }
  0x2a   : > { %334 = vmatpush.msra.mxu1 %v267_v52  ;;  %373 = vmatpush.msra.mxu2 %v600_v54  ;;  %v391_v31 = vld [vmem:[%s1042_s3 + $0x10] sm:$0xff]  ;;  %v390_v33 = vld [vmem:[%s1042_s3 + $0x8] sm:$0xff]  ;;  %v389_v35 = vld [vmem:[%s1042_s3] sm:$0xff] }
  0x2b   : > { %315 = vmatpush.msra.mxu0 %v584_v55  ;;  %374 = vmatmul.f32.vlgmr.msra.gmra.mxu2 %v340_v56  ;;  %v634_v32 = vld [vmem:[%s1042_s3 + $0x110] sm:$0xff]  ;;  %v633_v34 = vld [vmem:[%s1042_s3 + $0x108] sm:$0xff]  ;;  %v632_v36 = vld [vmem:[%s1042_s3 + $0x100] sm:$0xff] }
  0x2c   : > { %335 = vmatpush.msra.mxu1 %v266_v57  ;;  %316 = vmatmul.f32.vlgmr.msra.gmra.mxu0 %v806_v27  ;;  %v659_v40 = vld [vmem:[%s1041_s2] ss:$0 sm:$0xff] }
  0x2d   : > { %336 = vmatmul.f32.vlgmr.msra.gmra.mxu1 %v265_v58  ;;  %443 = vmatpush.msrb.mxu0 %v404_v59  ;;  %v660_v50 = vld [vmem:[%s1043_s4] ss:$0 sm:$0xff] }
  0x2e   : > { %481 = vmatpush.msrb.mxu1 %v647_v60  ;;  %433 = vmatpush.msra.mxu3 %v621_v12  ;;  %v661_v54 = vld [vmem:[%s256_s9] ss:$0 sm:$0xff] }
  0x2f   : > { %444 = vmatpush.msrb.mxu0 %v403_v61 }
  0x30   : > { %482 = vmatpush.msrb.mxu1 %v646_v62  ;;  %434 = vmatpush.msra.mxu3 %v620_v15 }
  0x31   : > { %445 = vmatpush.msrb.mxu0 %v402_v63 }
  0x32   : > { %483 = vmatpush.msrb.mxu1 %v645_v0  ;;  %435 = vmatpush.msra.mxu3 %v619_v18 }
  0x33   : > { %446 = vmatpush.msrb.mxu0 %v401_v1 }
  0x34   : > { %484 = vmatpush.msrb.mxu1 %v644_v2  ;;  %436 = vmatpush.msra.mxu3 %v618_v21 }
  0x35   : > { %447 = vmatpush.msrb.mxu0 %v400_v3 }
  0x36   : > { %485 = vmatpush.msrb.mxu1 %v643_v4  ;;  %437 = vmatpush.msra.mxu3 %v617_v24 }
  0x37   : > { %448 = vmatpush.msrb.mxu0 %v399_v5 }
  0x38   : > { %486 = vmatpush.msrb.mxu1 %v642_v6  ;;  %438 = vmatpush.msra.mxu3 %v616_v28 }
  0x39   : > { %449 = vmatpush.msrb.mxu0 %v398_v7 }
  0x3a   : > { %487 = vmatpush.msrb.mxu1 %v641_v8 }
  0x3b   : > { %450 = vmatpush.msrb.mxu0 %v397_v13 }
  0x3c   : > { %488 = vmatpush.msrb.mxu1 %v640_v14 }
  0x3d   : > { %451 = vmatpush.msrb.mxu0 %v396_v16 }
  0x3e   : > { %489 = vmatpush.msrb.mxu1 %v639_v17 }
  0x3f   : > { %452 = vmatpush.msrb.mxu0 %v395_v19 }
  0x40   : > { %490 = vmatpush.msrb.mxu1 %v638_v20 }
  0x41   : > { %453 = vmatpush.msrb.mxu0 %v394_v22 }
  0x42   : > { %491 = vmatpush.msrb.mxu1 %v637_v23 }
  0x43   : > { %454 = vmatpush.msrb.mxu0 %v393_v25 }
  0x44   : > { %492 = vmatpush.msrb.mxu1 %v636_v26 }
  0x45   : > { %455 = vmatpush.msrb.mxu0 %v392_v29 }
  0x46   : > { %493 = vmatpush.msrb.mxu1 %v635_v30 }
  0x47   : > { %456 = vmatpush.msrb.mxu0 %v391_v31 }
  0x48   : > { %494 = vmatpush.msrb.mxu1 %v634_v32 }
  0x49   : > { %457 = vmatpush.msrb.mxu0 %v390_v33 }
  0x4a   : > { %495 = vmatpush.msrb.mxu1 %v633_v34 }
  0x4b   : > { %458 = vmatpush.msrb.mxu0 %v389_v35 }
  0x4c   : > { %496 = vmatpush.msrb.mxu1 %v632_v36 }
  0xa9   : > { %v317_v37 = vpop.f32.mrf.mxu0 }
  0xaa   : > { %v337_v38 = vpop.f32.mrf.mxu1 }
  0xab   : > { %v338_v39 = vadd.f32 %v337_v38, %v317_v37 }
  0xae   : > { %v375_v41 = vpop.f32.mrf.mxu2 }
  0xaf   : > { %v378_v42 = vadd.f32 %v375_v41, %v338_v39 }
  0xb1   : > { %v383_v43 = vadd.f32 %v659_v40, %v378_v42 }
  0xb3   : > { %v384_v44 = vmax.f32 %v383_v43, 0.0 }
  0xb5   : > { %387 = vst [vmem:[#allocation3 + $0x1] sm:$0xff] %v384_v44  ;;  %439 = vmatmul.f32.vlgmr.msra.gmra.mxu3 %v384_v44 }
  0xbc   : > { %v388_v45 = vld [vmem:[#allocation3] sm:$0xff] }
  0xbd   : > { %v463_v46 = vld [vmem:[#allocation3 + $0x2] sm:$0xff]  ;;  %459 = vmatmul.f32.vlgmr.msrb.gmra.mxu0 %v388_v45 }
  0xbe   : > { %497 = vmatmul.f32.vlgmr.msrb.gmra.mxu1 %v463_v46 }
 0x138   : > { %v440_v48 = vpop.f32.mrf.mxu3 }
 0x13a   : > { %v460_v47 = vpop.f32.mrf.mxu0 }
 0x13b   : > { %v461_v49 = vadd.f32 %v460_v47, %v440_v48  ;;  %v498_v51 = vpop.f32.mrf.mxu1 }
 0x13d   : > { %v501_v52 = vadd.f32 %v498_v51, %v461_v49 }
 0x13f   : > { %v506_v53 = vadd.f32 %v660_v50, %v501_v52 }
 0x141   : > { %v507_v55 = vmax.f32 %v506_v53, 0.0 }
 0x143   : > { %v512_v56 = vmul.f32 %v661_v54, %v507_v55 }
 0x145   : > { %v513_v57 = vadd.f32 %v512_v56, %v806_v27 }
 0x147   : > { %514 = vst [vmem:[%s260_s15] sm:$0xff] %v513_v57 }
 0x148 PF: > { %s16_s21 = sadd.s32 1, %s668_s21  }
 0x149   : > { %p13_p4 = scmp.ge.s32.totalorder %s16_s21, 4  }
 0x14b   :  { %15 = sbr.rel (!%p13_p4) target bundleno = 1 (0x1), region = 81 }

</bundles_post_ra>
